<compile_context>
chip_gen: v7x
topology: tpu7x:2x2x1
jax: 0.10.0
libtpu: 0.0.40
codegen_flags: <defaults>
</compile_context>

<pallas_src>
import functools

import jax
import jax.numpy as jnp
from jax.experimental import pallas as pl
from jax.experimental.pallas import tpu as pltpu

EPS = 1e-5          # nn.BatchNorm2d default
NEG_SLOPE = 0.01    # nn.LeakyReLU() default negative_slope


# ---------------------------------------------------------------------------
# Small helpers
# ---------------------------------------------------------------------------
def _round_up(x, m):
    return ((x + m - 1) // m) * m


def _pick_tile_m(m_rows, per_row_bytes, tile_m=None, budget=8 << 20):
    """Pick an (8-aligned) M tile that keeps the working set well under VMEM."""
    if tile_m is None:
        tile_m = (budget // max(per_row_bytes, 1)) // 8 * 8
        tile_m = max(8, min(1024, tile_m))
    tile_m = max(8, _round_up(tile_m, 8))
    tile_m = min(tile_m, _round_up(m_rows, 8))
    m_pad = _round_up(m_rows, tile_m)
    return tile_m, m_pad


def _vmem_limit(block_bytes):
    # 2x for double-buffering + headroom; never below 16 MiB, capped for v7x.
    return int(min(max(2 * block_bytes + (4 << 20), 16 << 20), 40 << 20))


# ---------------------------------------------------------------------------
# Kernel A: tiled conv-as-matmul + per-channel sum / sumsq accumulation.
# Padded M rows are all-zero patches -> contribute 0 to y and to the stats.
# ---------------------------------------------------------------------------
def _conv_stats_kernel(p_ref, w_ref, y_ref, sum_ref, ssq_ref):
    # Convolution expressed as an MXU matmul over im2col patches (f32 acc).
    y = jnp.dot(p_ref[...], w_ref[...], preferred_element_type=jnp.float32)

    # Statistics are taken from the value in the *stored* dtype so that the
    # later normalisation passes see exactly-consistent moments.
    y_store = y.astype(y_ref.dtype)
    y32 = y_store.astype(jnp.float32)

    @pl.when(pl.program_id(0) == 0)
    def _():
        sum_ref[...] = jnp.zeros_like(sum_ref)
        ssq_ref[...] = jnp.zeros_like(ssq_ref)

    sum_ref[...] += jnp.sum(y32, axis=0, keepdims=True)
    ssq_ref[...] += jnp.sum(y32 * y32, axis=0, keepdims=True)

    y_ref[...] = y_store


def conv_matmul_bn_stats(patches, w_mat, *, out_dtype, tile_m=None):
    """patches: (M, K), w_mat: (K, Cout) -> (y (M, Cout), sum (Cout,), sumsq (Cout,))."""
    m_true, k = patches.shape
    cout = w_mat.shape[1]

    in_isz = jnp.dtype(patches.dtype).itemsize
    out_isz = jnp.dtype(out_dtype).itemsize
    per_row = 2 * (k * in_isz + cout * out_isz + cout * 4)
    tm, m_pad = _pick_tile_m(m_true, per_row, tile_m)
    if m_pad != m_true:
        patches = jnp.pad(patches, ((0, m_pad - m_true), (0, 0)))

    block_bytes = (tm * k * in_isz
                   + k * cout * jnp.dtype(w_mat.dtype).itemsize
                   + tm * cout * out_isz + 2 * cout * 4)

    y, s, sq = pl.pallas_call(
        _conv_stats_kernel,
        grid=(m_pad // tm,),
        in_specs=[pl.BlockSpec((tm, k), lambda i: (i, 0)),
                  pl.BlockSpec((k, cout), lambda i: (0, 0))],
        out_specs=(pl.BlockSpec((tm, cout), lambda i: (i, 0)),
                   pl.BlockSpec((1, cout), lambda i: (0, 0)),   # resident accumulator
                   pl.BlockSpec((1, cout), lambda i: (0, 0))),  # resident accumulator
        out_shape=(jax.ShapeDtypeStruct((m_pad, cout), out_dtype),
                   jax.ShapeDtypeStruct((1, cout), jnp.float32),
                   jax.ShapeDtypeStruct((1, cout), jnp.float32)),
        compiler_params=pltpu.CompilerParams(
            # "arbitrary": the stat outputs are accumulated across the grid axis.
            dimension_semantics=("arbitrary",),
            vmem_limit_bytes=_vmem_limit(block_bytes)),
    )(patches, w_mat)
    return y[:m_true], s[0], sq[0]


# ---------------------------------------------------------------------------
# Kernel B: elementwise folded-BN + LeakyReLU  (h = lrelu(y*scale + shift))
# Applied to the conv1 *image* before conv2's zero-padded im2col, so that the
# padding stays exactly zero (this was the correctness bug in the prior rev).
# ---------------------------------------------------------------------------
def _bn_act_kernel(y_ref, sc_ref, sh_ref, o_ref):
    h = y_ref[...].astype(jnp.float32) * sc_ref[...] + sh_ref[...]
    o_ref[...] = jnp.where(h >= 0, h, NEG_SLOPE * h).astype(o_ref.dtype)


def bn_act(y, scale, shift, *, out_dtype, tile_m=None):
    m_true, c = y.shape
    isz = jnp.dtype(y.dtype).itemsize
    osz = jnp.dtype(out_dtype).itemsize
    per_row = 2 * (c * isz + c * osz)
    tm, m_pad = _pick_tile_m(m_true, per_row, tile_m)
    if m_pad != m_true:
        y = jnp.pad(y, ((0, m_pad - m_true), (0, 0)))
    vec = lambda a: a.reshape(1, c).astype(jnp.float32)
    block_bytes = tm * c * (isz + osz) + 2 * c * 4
    out = pl.pallas_call(
        _bn_act_kernel,
        grid=(m_pad // tm,),
        in_specs=[pl.BlockSpec((tm, c), lambda i: (i, 0)),
                  pl.BlockSpec((1, c), lambda i: (0, 0)),
                  pl.BlockSpec((1, c), lambda i: (0, 0))],
        out_specs=pl.BlockSpec((tm, c), lambda i: (i, 0)),
        out_shape=jax.ShapeDtypeStruct((m_pad, c), out_dtype),
        compiler_params=pltpu.CompilerParams(
            dimension_semantics=("parallel",),      # independent tiles -> megacore
            vmem_limit_bytes=_vmem_limit(block_bytes)),
    )(y, vec(scale), vec(shift))
    return out[:m_true]


# ---------------------------------------------------------------------------
# Kernel C: elementwise finalize  LeakyReLU( BN2(main) + BN_s(shortcut) )
# ---------------------------------------------------------------------------
def _finalize_kernel(ym_ref, ys_ref, scm_ref, shm_ref, scs_ref, shs_ref, o_ref):
    m = ym_ref[...].astype(jnp.float32) * scm_ref[...] + shm_ref[...]
    s = ys_ref[...].astype(jnp.float32) * scs_ref[...] + shs_ref[...]
    r = m + s
    o_ref[...] = jnp.where(r >= 0, r, NEG_SLOPE * r).astype(o_ref.dtype)


def bn_add_act(y_main, y_short, scale_m, shift_m, scale_s, shift_s, *, tile_m=None):
    m_true, c = y_main.shape
    isz = jnp.dtype(y_main.dtype).itemsize
    per_row = 2 * (2 * c * isz + c * 4)
    tm, m_pad = _pick_tile_m(m_true, per_row, tile_m)
    if m_pad != m_true:
        pad = ((0, m_pad - m_true), (0, 0))
        y_main = jnp.pad(y_main, pad)
        y_short = jnp.pad(y_short, pad)

    vec = lambda a: a.reshape(1, c).astype(jnp.float32)
    block_bytes = 2 * tm * c * isz + tm * c * 4 + 4 * c * 4
    out = pl.pallas_call(
        _finalize_kernel,
        grid=(m_pad // tm,),
        in_specs=[pl.BlockSpec((tm, c), lambda i: (i, 0)),
                  pl.BlockSpec((tm, c), lambda i: (i, 0)),
                  pl.BlockSpec((1, c), lambda i: (0, 0)),
                  pl.BlockSpec((1, c), lambda i: (0, 0)),
                  pl.BlockSpec((1, c), lambda i: (0, 0)),
                  pl.BlockSpec((1, c), lambda i: (0, 0))],
        out_specs=pl.BlockSpec((tm, c), lambda i: (i, 0)),
        out_shape=jax.ShapeDtypeStruct((m_pad, c), jnp.float32),
        compiler_params=pltpu.CompilerParams(
            dimension_semantics=("parallel",),
            vmem_limit_bytes=_vmem_limit(block_bytes)),
    )(y_main, y_short, vec(scale_m), vec(shift_m), vec(scale_s), vec(shift_s))
    return out[:m_true]


# ---------------------------------------------------------------------------
# Host-side glue (layout conversion, im2col, folded-BN coefficients)
# ---------------------------------------------------------------------------
def _im2col_nhwc(x, k, stride, pad):
    """x: (N,H,W,C) -> (N*Ho*Wo, k*k*C), tap-major / channel-minor."""
    n, h, w, c = x.shape
    xp = jnp.pad(x, ((0, 0), (pad, pad), (pad, pad), (0, 0)))
    ho = (h + 2 * pad - k) // stride + 1
    wo = (w + 2 * pad - k) // stride + 1
    cols = []
    for di in range(k):
        for dj in range(k):
            cols.append(xp[:, di:di + stride * ho:stride,
                           dj:dj + stride * wo:stride, :])
    patches = jnp.stack(cols, axis=-2)              # (N, Ho, Wo, k*k, C)
    return patches.reshape(n * ho * wo, k * k * c), ho, wo


def _conv_w_to_mat(w):
    """PyTorch (Cout, Cin, kh, kw) -> (kh*kw*Cin, Cout), matching im2col order."""
    cout, cin, kh, kw = w.shape
    return jnp.transpose(w, (2, 3, 1, 0)).reshape(kh * kw * cin, cout)


def _embed_1x1_in_3x3(ws):
    """(Cout,Cin,1,1) -> (Cout,Cin,3,3) centre-tap-only, so a pad=1/stride=s 3x3
    conv reproduces the pad=0/stride=s 1x1 shortcut conv exactly."""
    cout, cin, _, _ = ws.shape
    w3 = jnp.zeros((cout, cin, 3, 3), ws.dtype)
    return w3.at[:, :, 1, 1].set(ws[:, :, 0, 0])


def _bn_scale_shift(s, sq, count, gamma, beta):
    """Fold training-mode BN into a per-channel scale/shift (biased variance)."""
    mean = s / count
    var = jnp.maximum(sq / count - mean * mean, 0.0)
    scale = gamma * jax.lax.rsqrt(var + EPS)
    shift = beta - mean * scale
    return scale, shift


def basic_encode_block_forward(x_nchw, params, stride, *,
                               compute_dtype=jnp.bfloat16, tile_m=None):
    """Pallas implementation of BasicEncodeBlock.forward (i_block=0, preactive=False)."""
    n, cin, h, w = x_nchw.shape
    cout = params["w1"].shape[0]
    x = jnp.transpose(x_nchw, (0, 2, 3, 1))                 # NCHW -> NHWC

    # ---- stage 1: conv1 (3x3, stride) fused with the 1x1 shortcut conv ----------
    # Both convs share the same im2col patches; the 1x1 weight is embedded at the
    # centre tap and concatenated along Cout so a single MXU matmul produces both
    # pre-BN outputs (and a single pass over x), plus per-channel BN statistics.
    p1, ho, wo = _im2col_nhwc(x.astype(compute_dtype), 3, stride, 1)
    w_a = jnp.concatenate(
        [_conv_w_to_mat(params["w1"]),
         _conv_w_to_mat(_embed_1x1_in_3x3(params["ws"]))],
        axis=1).astype(compute_dtype)
    m_true = n * ho * wo
    y_a, s_a, sq_a = conv_matmul_bn_stats(p1, w_a, out_dtype=compute_dtype,
                                          tile_m=tile_m)

    # Per-channel folded-BN coefficients for conv1 (first half) and shortcut (second).
    scale_a, shift_a = _bn_scale_shift(
        s_a, sq_a, float(m_true),
        jnp.concatenate([params["g1"], params["gs"]]),
        jnp.concatenate([params["b1"], params["bs"]]))
    scale1, scale_s = scale_a[:cout], scale_a[cout:]
    shift1, shift_s = shift_a[:cout], shift_a[cout:]

    # ---- stage 1.5: BN1 + LeakyReLU on the conv1 image ---------------------------
    # Must happen BEFORE conv2's zero-padded im2col so the padded border stays
    # exactly zero (folding the affine into the conv2 matmul corrupts the border).
    h1 = bn_act(y_a[:, :cout], scale1, shift1, out_dtype=compute_dtype,
                tile_m=tile_m)
    h1 = h1.reshape(n, ho, wo, cout)

    # ---- stage 2: conv2 (3x3, stride 1) + BN2 statistics -------------------------
    p2, _, _ = _im2col_nhwc(h1, 3, 1, 1)
    y2, s_2, sq_2 = conv_matmul_bn_stats(
        p2, _conv_w_to_mat(params["w2"]).astype(compute_dtype),
        out_dtype=compute_dtype, tile_m=tile_m)
    scale2, shift2 = _bn_scale_shift(s_2, sq_2, float(m_true),
                                     params["g2"], params["b2"])

    # ---- stage 3: BN2(main) + BN_s(shortcut) + add + LeakyReLU -------------------
    out = bn_add_act(y2, y_a[:, cout:], scale2, shift2, scale_s, shift_s,
                     tile_m=tile_m)
    return jnp.transpose(out.reshape(n, ho, wo, cout), (0, 3, 1, 2))   # -> NCHW


# ---------------------------------------------------------------------------
# Pure-JAX reference (mirrors the PyTorch module) for correctness checks
# ---------------------------------------------------------------------------
def _conv_ref(x, w, stride, pad):
    return jax.lax.conv_general_dilated(
        x, w, window_strides=(stride, stride),
        padding=((pad, pad), (pad, pad)),
        dimension_numbers=("NCHW", "OIHW", "NCHW"),
        precision=jax.lax.Precision.HIGHEST)


def _bn_ref(x, g, b):
    mean = x.mean(axis=(0, 2, 3), keepdims=True)
    var = ((x - mean) ** 2).mean(axis=(0, 2, 3), keepdims=True)
    return (x - mean) * jax.lax.rsqrt(var + EPS) * g.reshape(1, -1, 1, 1) \
        + b.reshape(1, -1, 1, 1)


def _lrelu(x):
    return jnp.where(x >= 0, x, NEG_SLOPE * x)


def reference_forward(x, p, stride):
    h = _lrelu(_bn_ref(_conv_ref(x, p["w1"], stride, 1), p["g1"], p["b1"]))
    main = _bn_ref(_conv_ref(h, p["w2"], 1, 1), p["g2"], p["b2"])
    sc = _bn_ref(_conv_ref(x, p["ws"], stride, 0), p["gs"], p["bs"])
    return _lrelu(main + sc)


# ---------------------------------------------------------------------------
if __name__ == "__main__":
    key = jax.random.PRNGKey(0)

    def make_params(key, cin, cout):
        ks = jax.random.split(key, 7)
        return {
            "w1": 0.1 * jax.random.normal(ks[0], (cout, cin, 3, 3), jnp.float32),
            "g1": 1.0 + 0.1 * jax.random.normal(ks[1], (cout,), jnp.float32),
            "b1": 0.1 * jax.random.normal(ks[2], (cout,), jnp.float32),
            "w2": 0.1 * jax.random.normal(ks[3], (cout, cout, 3, 3), jnp.float32),
            "g2": 1.0 + 0.1 * jax.random.normal(ks[4], (cout,), jnp.float32),
            "b2": 0.1 * jax.random.normal(ks[5], (cout,), jnp.float32),
            "ws": 0.1 * jax.random.normal(ks[6], (cout, cin, 1, 1), jnp.float32),
            "gs": jnp.ones((cout,), jnp.float32),
            "bs": jnp.zeros((cout,), jnp.float32),
        }

    def run_case(x, params, stride, compute_dtype, tile_m, atol, rtol):
        fwd = jax.jit(functools.partial(
            basic_encode_block_forward, stride=stride,
            compute_dtype=compute_dtype, tile_m=tile_m))
        out = jax.block_until_ready(fwd(x, params))
        ref = jax.block_until_ready(reference_forward(x, params, stride))
        assert out.shape == ref.shape, (out.shape, ref.shape)
        err = float(jnp.max(jnp.abs(out - ref)))
        assert jnp.allclose(out, ref, atol=atol, rtol=rtol), err
        return out

    kx, kp, kx2 = jax.random.split(key, 3)

    # Case 1: f32, tile_m=64 -> 2-step grid exercises cross-tile BN stat accumulation.
    N, Cin, H, W, Cout, stride = 2, 4, 16, 16, 8, 2
    x = jax.random.normal(kx, (N, Cin, H, W), jnp.float32)
    params = make_params(kp, Cin, Cout)
    run_case(x, params, stride, jnp.float32, 64, atol=5e-3, rtol=5e-3)

    # Case 2: bf16 MXU fast path (f32 stats/normalisation), loose tolerance.
    run_case(x, params, stride, jnp.bfloat16, 64, atol=1e-1, rtol=1e-1)

    # Case 3: f32, spatial size that makes M not a multiple of the tile
    #         -> exercises M-padding (padded rows are zero patches -> stats safe).
    x2 = jax.random.normal(kx2, (N, Cin, 10, 10), jnp.float32)
    run_case(x2, params, stride, jnp.float32, 64, atol=5e-3, rtol=5e-3)

    print("KERNEL_OK")
</pallas_src>

<mosaic_0001>
module attributes {stable_mosaic.version = 11 : i64} {
  func.func @_conv_stats_kernel(%arg0: i32, %arg1: memref<64x36xf32, #tpu.memory_space<vmem>>, %arg2: memref<36x16xf32, #tpu.memory_space<vmem>>, %arg3: memref<64x16xf32, #tpu.memory_space<vmem>>, %arg4: memref<1x16xf32, #tpu.memory_space<vmem>>, %arg5: memref<1x16xf32, #tpu.memory_space<vmem>>) attributes {dimension_semantics = [#tpu.dimension_semantics<arbitrary>], iteration_bounds = array<i64: 2>, scalar_prefetch = 0 : i64, scratch_operands = 0 : i64, tpu.core_type = #tpu.core_type<tc>, window_params = [{transform_indices = @transform_0, window_bounds = array<i64: 64, 36>}, {pipeline_mode = #tpu.pipeline_mode<synchronous>, transform_indices = @transform_1, window_bounds = array<i64: 36, 16>}, {transform_indices = @transform_2, window_bounds = array<i64: 64, 16>}, {pipeline_mode = #tpu.pipeline_mode<synchronous>, transform_indices = @transform_3, window_bounds = array<i64: 1, 16>}, {pipeline_mode = #tpu.pipeline_mode<synchronous>, transform_indices = @transform_4, window_bounds = array<i64: 1, 16>}]} {
    %c0 = arith.constant 0 : index
    %c0_0 = arith.constant 0 : index
    %0 = vector.load %arg1[%c0, %c0_0] : memref<64x36xf32, #tpu.memory_space<vmem>>, vector<64x36xf32>
    %c0_1 = arith.constant 0 : index
    %c0_2 = arith.constant 0 : index
    %1 = vector.load %arg2[%c0_1, %c0_2] : memref<36x16xf32, #tpu.memory_space<vmem>>, vector<36x16xf32>
    %cst = arith.constant dense<0.000000e+00> : vector<64x16xf32>
    %2 = tpu.matmul %0, %1, %cst {dimension_numbers = #tpu.dot_dimension_numbers<[1], [0], [0], [1], [0, 0, 1, 1], [], []>} : vector<64x36xf32>, vector<36x16xf32>, vector<64x16xf32> -> vector<64x16xf32>
    %c0_i32 = arith.constant 0 : i32
    %3 = arith.cmpi eq, %arg0, %c0_i32 : i32
    %4 = arith.extui %3 : i1 to i32
    %c0_i32_3 = arith.constant 0 : i32
    %5 = arith.cmpi ne, %4, %c0_i32_3 : i32
    scf.if %5 {
      %cst_16 = arith.constant 0.000000e+00 : f32
      %18 = vector.broadcast %cst_16 : f32 to vector<1x16xf32>
      %c0_17 = arith.constant 0 : index
      %c0_18 = arith.constant 0 : index
      %19 = vector.load %arg4[%c0_17, %c0_18] : memref<1x16xf32, #tpu.memory_space<vmem>>, vector<1x16xf32>
      tpu.vector_store %arg4[%c0_17, %c0_18], %18 {strides = array<i32>} : memref<1x16xf32, #tpu.memory_space<vmem>>, vector<1x16xf32>,
      %cst_19 = arith.constant 0.000000e+00 : f32
      %20 = vector.broadcast %cst_19 : f32 to vector<1x16xf32>
      %c0_20 = arith.constant 0 : index
      %c0_21 = arith.constant 0 : index
      %21 = vector.load %arg5[%c0_20, %c0_21] : memref<1x16xf32, #tpu.memory_space<vmem>>, vector<1x16xf32>
      tpu.vector_store %arg5[%c0_20, %c0_21], %20 {strides = array<i32>} : memref<1x16xf32, #tpu.memory_space<vmem>>, vector<1x16xf32>,
    } else {
    }
    %c0_4 = arith.constant 0 : index
    %c0_5 = arith.constant 0 : index
    %6 = vector.load %arg4[%c0_4, %c0_5] : memref<1x16xf32, #tpu.memory_space<vmem>>, vector<1x16xf32>
    %cst_6 = arith.constant dense<0.000000e+00> : vector<16xf32>
    %7 = vector.multi_reduction <add>, %2, %cst_6 [0] : vector<64x16xf32> to vector<16xf32>
    %8 = vector.shape_cast %7 : vector<16xf32> to vector<1x16xf32>
    %9 = arith.addf %6, %8 : vector<1x16xf32>
    %c0_7 = arith.constant 0 : index
    %c0_8 = arith.constant 0 : index
    %10 = vector.load %arg4[%c0_7, %c0_8] : memref<1x16xf32, #tpu.memory_space<vmem>>, vector<1x16xf32>
    tpu.vector_store %arg4[%c0_7, %c0_8], %9 {strides = array<i32>} : memref<1x16xf32, #tpu.memory_space<vmem>>, vector<1x16xf32>,
    %c0_9 = arith.constant 0 : index
    %c0_10 = arith.constant 0 : index
    %11 = vector.load %arg5[%c0_9, %c0_10] : memref<1x16xf32, #tpu.memory_space<vmem>>, vector<1x16xf32>
    %12 = arith.mulf %2, %2 : vector<64x16xf32>
    %cst_11 = arith.constant dense<0.000000e+00> : vector<16xf32>
    %13 = vector.multi_reduction <add>, %12, %cst_11 [0] : vector<64x16xf32> to vector<16xf32>
    %14 = vector.shape_cast %13 : vector<16xf32> to vector<1x16xf32>
    %15 = arith.addf %11, %14 : vector<1x16xf32>
    %c0_12 = arith.constant 0 : index
    %c0_13 = arith.constant 0 : index
    %16 = vector.load %arg5[%c0_12, %c0_13] : memref<1x16xf32, #tpu.memory_space<vmem>>, vector<1x16xf32>
    tpu.vector_store %arg5[%c0_12, %c0_13], %15 {strides = array<i32>} : memref<1x16xf32, #tpu.memory_space<vmem>>, vector<1x16xf32>,
    %c0_14 = arith.constant 0 : index
    %c0_15 = arith.constant 0 : index
    %17 = vector.load %arg3[%c0_14, %c0_15] : memref<64x16xf32, #tpu.memory_space<vmem>>, vector<64x16xf32>
    tpu.vector_store %arg3[%c0_14, %c0_15], %2 {strides = array<i32>} : memref<64x16xf32, #tpu.memory_space<vmem>>, vector<64x16xf32>,
    return
  }
  func.func @transform_0(%arg0: i32) -> (i32, i32) {
    %c0_i32 = arith.constant 0 : i32
    %c0_i32_0 = arith.constant 0 : i32
    return %arg0, %c0_i32 : i32, i32
  }
  func.func @transform_1(%arg0: i32) -> (i32, i32) {
    %c0_i32 = arith.constant 0 : i32
    %c0_i32_0 = arith.constant 0 : i32
    %c0_i32_1 = arith.constant 0 : i32
    return %c0_i32, %c0_i32_0 : i32, i32
  }
  func.func @transform_2(%arg0: i32) -> (i32, i32) {
    %c0_i32 = arith.constant 0 : i32
    %c0_i32_0 = arith.constant 0 : i32
    return %arg0, %c0_i32 : i32, i32
  }
  func.func @transform_3(%arg0: i32) -> (i32, i32) {
    %c0_i32 = arith.constant 0 : i32
    %c0_i32_0 = arith.constant 0 : i32
    %c0_i32_1 = arith.constant 0 : i32
    return %c0_i32, %c0_i32_0 : i32, i32
  }
  func.func @transform_4(%arg0: i32) -> (i32, i32) {
    %c0_i32 = arith.constant 0 : i32
    %c0_i32_0 = arith.constant 0 : i32
    %c0_i32_1 = arith.constant 0 : i32
    return %c0_i32, %c0_i32_0 : i32, i32
  }
}

module attributes {stable_mosaic.version = 11 : i64} {
  func.func @_bn_act_kernel(%arg0: i32, %arg1: memref<64x8xf32, #tpu.memory_space<vmem>>, %arg2: memref<1x8xf32, #tpu.memory_space<vmem>>, %arg3: memref<1x8xf32, #tpu.memory_space<vmem>>, %arg4: memref<64x8xf32, #tpu.memory_space<vmem>>) attributes {dimension_semantics = [#tpu.dimension_semantics<parallel>], iteration_bounds = array<i64: 2>, scalar_prefetch = 0 : i64, scratch_operands = 0 : i64, tpu.core_type = #tpu.core_type<tc>, window_params = [{transform_indices = @transform_0, window_bounds = array<i64: 64, 8>}, {pipeline_mode = #tpu.pipeline_mode<synchronous>, transform_indices = @transform_1, window_bounds = array<i64: 1, 8>}, {pipeline_mode = #tpu.pipeline_mode<synchronous>, transform_indices = @transform_2, window_bounds = array<i64: 1, 8>}, {transform_indices = @transform_3, window_bounds = array<i64: 64, 8>}]} {
    %c0 = arith.constant 0 : index
    %c0_0 = arith.constant 0 : index
    %0 = vector.load %arg1[%c0, %c0_0] : memref<64x8xf32, #tpu.memory_space<vmem>>, vector<64x8xf32>
    %c0_1 = arith.constant 0 : index
    %c0_2 = arith.constant 0 : index
    %1 = vector.load %arg2[%c0_1, %c0_2] : memref<1x8xf32, #tpu.memory_space<vmem>>, vector<1x8xf32>
    %2 = vector.broadcast %1 : vector<1x8xf32> to vector<64x8xf32>
    %3 = arith.mulf %0, %2 : vector<64x8xf32>
    %c0_3 = arith.constant 0 : index
    %c0_4 = arith.constant 0 : index
    %4 = vector.load %arg3[%c0_3, %c0_4] : memref<1x8xf32, #tpu.memory_space<vmem>>, vector<1x8xf32>
    %5 = vector.broadcast %4 : vector<1x8xf32> to vector<64x8xf32>
    %6 = arith.addf %3, %5 : vector<64x8xf32>
    %cst = arith.constant 0.000000e+00 : f32
    %7 = vector.broadcast %cst : f32 to vector<64x8xf32>
    %8 = arith.cmpf oge, %6, %7 : vector<64x8xf32>
    %cst_5 = arith.constant 0.00999999977 : f32
    %9 = vector.broadcast %cst_5 : f32 to vector<64x8xf32>
    %10 = arith.mulf %9, %6 : vector<64x8xf32>
    %11 = arith.select %8, %6, %10 : vector<64x8xi1>, vector<64x8xf32>
    %c0_6 = arith.constant 0 : index
    %c0_7 = arith.constant 0 : index
    %12 = vector.load %arg4[%c0_6, %c0_7] : memref<64x8xf32, #tpu.memory_space<vmem>>, vector<64x8xf32>
    tpu.vector_store %arg4[%c0_6, %c0_7], %11 {strides = array<i32>} : memref<64x8xf32, #tpu.memory_space<vmem>>, vector<64x8xf32>,
    return
  }
  func.func @transform_0(%arg0: i32) -> (i32, i32) {
    %c0_i32 = arith.constant 0 : i32
    %c0_i32_0 = arith.constant 0 : i32
    return %arg0, %c0_i32 : i32, i32
  }
  func.func @transform_1(%arg0: i32) -> (i32, i32) {
    %c0_i32 = arith.constant 0 : i32
    %c0_i32_0 = arith.constant 0 : i32
    %c0_i32_1 = arith.constant 0 : i32
    return %c0_i32, %c0_i32_0 : i32, i32
  }
  func.func @transform_2(%arg0: i32) -> (i32, i32) {
    %c0_i32 = arith.constant 0 : i32
    %c0_i32_0 = arith.constant 0 : i32
    %c0_i32_1 = arith.constant 0 : i32
    return %c0_i32, %c0_i32_0 : i32, i32
  }
  func.func @transform_3(%arg0: i32) -> (i32, i32) {
    %c0_i32 = arith.constant 0 : i32
    %c0_i32_0 = arith.constant 0 : i32
    return %arg0, %c0_i32 : i32, i32
  }
}

module attributes {stable_mosaic.version = 11 : i64} {
  func.func @_conv_stats_kernel(%arg0: i32, %arg1: memref<64x72xf32, #tpu.memory_space<vmem>>, %arg2: memref<72x8xf32, #tpu.memory_space<vmem>>, %arg3: memref<64x8xf32, #tpu.memory_space<vmem>>, %arg4: memref<1x8xf32, #tpu.memory_space<vmem>>, %arg5: memref<1x8xf32, #tpu.memory_space<vmem>>) attributes {dimension_semantics = [#tpu.dimension_semantics<arbitrary>], iteration_bounds = array<i64: 2>, scalar_prefetch = 0 : i64, scratch_operands = 0 : i64, tpu.core_type = #tpu.core_type<tc>, window_params = [{transform_indices = @transform_0, window_bounds = array<i64: 64, 72>}, {pipeline_mode = #tpu.pipeline_mode<synchronous>, transform_indices = @transform_1, window_bounds = array<i64: 72, 8>}, {transform_indices = @transform_2, window_bounds = array<i64: 64, 8>}, {pipeline_mode = #tpu.pipeline_mode<synchronous>, transform_indices = @transform_3, window_bounds = array<i64: 1, 8>}, {pipeline_mode = #tpu.pipeline_mode<synchronous>, transform_indices = @transform_4, window_bounds = array<i64: 1, 8>}]} {
    %c0 = arith.constant 0 : index
    %c0_0 = arith.constant 0 : index
    %0 = vector.load %arg1[%c0, %c0_0] : memref<64x72xf32, #tpu.memory_space<vmem>>, vector<64x72xf32>
    %c0_1 = arith.constant 0 : index
    %c0_2 = arith.constant 0 : index
    %1 = vector.load %arg2[%c0_1, %c0_2] : memref<72x8xf32, #tpu.memory_space<vmem>>, vector<72x8xf32>
    %cst = arith.constant dense<0.000000e+00> : vector<64x8xf32>
    %2 = tpu.matmul %0, %1, %cst {dimension_numbers = #tpu.dot_dimension_numbers<[1], [0], [0], [1], [0, 0, 1, 1], [], []>} : vector<64x72xf32>, vector<72x8xf32>, vector<64x8xf32> -> vector<64x8xf32>
    %c0_i32 = arith.constant 0 : i32
    %3 = arith.cmpi eq, %arg0, %c0_i32 : i32
    %4 = arith.extui %3 : i1 to i32
    %c0_i32_3 = arith.constant 0 : i32
    %5 = arith.cmpi ne, %4, %c0_i32_3 : i32
    scf.if %5 {
      %cst_16 = arith.constant 0.000000e+00 : f32
      %18 = vector.broadcast %cst_16 : f32 to vector<1x8xf32>
      %c0_17 = arith.constant 0 : index
      %c0_18 = arith.constant 0 : index
      %19 = vector.load %arg4[%c0_17, %c0_18] : memref<1x8xf32, #tpu.memory_space<vmem>>, vector<1x8xf32>
      tpu.vector_store %arg4[%c0_17, %c0_18], %18 {strides = array<i32>} : memref<1x8xf32, #tpu.memory_space<vmem>>, vector<1x8xf32>,
      %cst_19 = arith.constant 0.000000e+00 : f32
      %20 = vector.broadcast %cst_19 : f32 to vector<1x8xf32>
      %c0_20 = arith.constant 0 : index
      %c0_21 = arith.constant 0 : index
      %21 = vector.load %arg5[%c0_20, %c0_21] : memref<1x8xf32, #tpu.memory_space<vmem>>, vector<1x8xf32>
      tpu.vector_store %arg5[%c0_20, %c0_21], %20 {strides = array<i32>} : memref<1x8xf32, #tpu.memory_space<vmem>>, vector<1x8xf32>,
    } else {
    }
    %c0_4 = arith.constant 0 : index
    %c0_5 = arith.constant 0 : index
    %6 = vector.load %arg4[%c0_4, %c0_5] : memref<1x8xf32, #tpu.memory_space<vmem>>, vector<1x8xf32>
    %cst_6 = arith.constant dense<0.000000e+00> : vector<8xf32>
    %7 = vector.multi_reduction <add>, %2, %cst_6 [0] : vector<64x8xf32> to vector<8xf32>
    %8 = vector.shape_cast %7 : vector<8xf32> to vector<1x8xf32>
    %9 = arith.addf %6, %8 : vector<1x8xf32>
    %c0_7 = arith.constant 0 : index
    %c0_8 = arith.constant 0 : index
    %10 = vector.load %arg4[%c0_7, %c0_8] : memref<1x8xf32, #tpu.memory_space<vmem>>, vector<1x8xf32>
    tpu.vector_store %arg4[%c0_7, %c0_8], %9 {strides = array<i32>} : memref<1x8xf32, #tpu.memory_space<vmem>>, vector<1x8xf32>,
    %c0_9 = arith.constant 0 : index
    %c0_10 = arith.constant 0 : index
    %11 = vector.load %arg5[%c0_9, %c0_10] : memref<1x8xf32, #tpu.memory_space<vmem>>, vector<1x8xf32>
    %12 = arith.mulf %2, %2 : vector<64x8xf32>
    %cst_11 = arith.constant dense<0.000000e+00> : vector<8xf32>
    %13 = vector.multi_reduction <add>, %12, %cst_11 [0] : vector<64x8xf32> to vector<8xf32>
    %14 = vector.shape_cast %13 : vector<8xf32> to vector<1x8xf32>
    %15 = arith.addf %11, %14 : vector<1x8xf32>
    %c0_12 = arith.constant 0 : index
    %c0_13 = arith.constant 0 : index
    %16 = vector.load %arg5[%c0_12, %c0_13] : memref<1x8xf32, #tpu.memory_space<vmem>>, vector<1x8xf32>
    tpu.vector_store %arg5[%c0_12, %c0_13], %15 {strides = array<i32>} : memref<1x8xf32, #tpu.memory_space<vmem>>, vector<1x8xf32>,
    %c0_14 = arith.constant 0 : index
    %c0_15 = arith.constant 0 : index
    %17 = vector.load %arg3[%c0_14, %c0_15] : memref<64x8xf32, #tpu.memory_space<vmem>>, vector<64x8xf32>
    tpu.vector_store %arg3[%c0_14, %c0_15], %2 {strides = array<i32>} : memref<64x8xf32, #tpu.memory_space<vmem>>, vector<64x8xf32>,
    return
  }
  func.func @transform_0(%arg0: i32) -> (i32, i32) {
    %c0_i32 = arith.constant 0 : i32
    %c0_i32_0 = arith.constant 0 : i32
    return %arg0, %c0_i32 : i32, i32
  }
  func.func @transform_1(%arg0: i32) -> (i32, i32) {
    %c0_i32 = arith.constant 0 : i32
    %c0_i32_0 = arith.constant 0 : i32
    %c0_i32_1 = arith.constant 0 : i32
    return %c0_i32, %c0_i32_0 : i32, i32
  }
  func.func @transform_2(%arg0: i32) -> (i32, i32) {
    %c0_i32 = arith.constant 0 : i32
    %c0_i32_0 = arith.constant 0 : i32
    return %arg0, %c0_i32 : i32, i32
  }
  func.func @transform_3(%arg0: i32) -> (i32, i32) {
    %c0_i32 = arith.constant 0 : i32
    %c0_i32_0 = arith.constant 0 : i32
    %c0_i32_1 = arith.constant 0 : i32
    return %c0_i32, %c0_i32_0 : i32, i32
  }
  func.func @transform_4(%arg0: i32) -> (i32, i32) {
    %c0_i32 = arith.constant 0 : i32
    %c0_i32_0 = arith.constant 0 : i32
    %c0_i32_1 = arith.constant 0 : i32
    return %c0_i32, %c0_i32_0 : i32, i32
  }
}

module attributes {stable_mosaic.version = 11 : i64} {
  func.func @_finalize_kernel(%arg0: i32, %arg1: memref<64x8xf32, #tpu.memory_space<vmem>>, %arg2: memref<64x8xf32, #tpu.memory_space<vmem>>, %arg3: memref<1x8xf32, #tpu.memory_space<vmem>>, %arg4: memref<1x8xf32, #tpu.memory_space<vmem>>, %arg5: memref<1x8xf32, #tpu.memory_space<vmem>>, %arg6: memref<1x8xf32, #tpu.memory_space<vmem>>, %arg7: memref<64x8xf32, #tpu.memory_space<vmem>>) attributes {dimension_semantics = [#tpu.dimension_semantics<parallel>], iteration_bounds = array<i64: 2>, scalar_prefetch = 0 : i64, scratch_operands = 0 : i64, tpu.core_type = #tpu.core_type<tc>, window_params = [{transform_indices = @transform_0, window_bounds = array<i64: 64, 8>}, {transform_indices = @transform_1, window_bounds = array<i64: 64, 8>}, {pipeline_mode = #tpu.pipeline_mode<synchronous>, transform_indices = @transform_2, window_bounds = array<i64: 1, 8>}, {pipeline_mode = #tpu.pipeline_mode<synchronous>, transform_indices = @transform_3, window_bounds = array<i64: 1, 8>}, {pipeline_mode = #tpu.pipeline_mode<synchronous>, transform_indices = @transform_4, window_bounds = array<i64: 1, 8>}, {pipeline_mode = #tpu.pipeline_mode<synchronous>, transform_indices = @transform_5, window_bounds = array<i64: 1, 8>}, {transform_indices = @transform_6, window_bounds = array<i64: 64, 8>}]} {
    %c0 = arith.constant 0 : index
    %c0_0 = arith.constant 0 : index
    %0 = vector.load %arg1[%c0, %c0_0] : memref<64x8xf32, #tpu.memory_space<vmem>>, vector<64x8xf32>
    %c0_1 = arith.constant 0 : index
    %c0_2 = arith.constant 0 : index
    %1 = vector.load %arg3[%c0_1, %c0_2] : memref<1x8xf32, #tpu.memory_space<vmem>>, vector<1x8xf32>
    %2 = vector.broadcast %1 : vector<1x8xf32> to vector<64x8xf32>
    %3 = arith.mulf %0, %2 : vector<64x8xf32>
    %c0_3 = arith.constant 0 : index
    %c0_4 = arith.constant 0 : index
    %4 = vector.load %arg4[%c0_3, %c0_4] : memref<1x8xf32, #tpu.memory_space<vmem>>, vector<1x8xf32>
    %5 = vector.broadcast %4 : vector<1x8xf32> to vector<64x8xf32>
    %6 = arith.addf %3, %5 : vector<64x8xf32>
    %c0_5 = arith.constant 0 : index
    %c0_6 = arith.constant 0 : index
    %7 = vector.load %arg2[%c0_5, %c0_6] : memref<64x8xf32, #tpu.memory_space<vmem>>, vector<64x8xf32>
    %c0_7 = arith.constant 0 : index
    %c0_8 = arith.constant 0 : index
    %8 = vector.load %arg5[%c0_7, %c0_8] : memref<1x8xf32, #tpu.memory_space<vmem>>, vector<1x8xf32>
    %9 = vector.broadcast %8 : vector<1x8xf32> to vector<64x8xf32>
    %10 = arith.mulf %7, %9 : vector<64x8xf32>
    %c0_9 = arith.constant 0 : index
    %c0_10 = arith.constant 0 : index
    %11 = vector.load %arg6[%c0_9, %c0_10] : memref<1x8xf32, #tpu.memory_space<vmem>>, vector<1x8xf32>
    %12 = vector.broadcast %11 : vector<1x8xf32> to vector<64x8xf32>
    %13 = arith.addf %10, %12 : vector<64x8xf32>
    %14 = arith.addf %6, %13 : vector<64x8xf32>
    %cst = arith.constant 0.000000e+00 : f32
    %15 = vector.broadcast %cst : f32 to vector<64x8xf32>
    %16 = arith.cmpf oge, %14, %15 : vector<64x8xf32>
    %cst_11 = arith.constant 0.00999999977 : f32
    %17 = vector.broadcast %cst_11 : f32 to vector<64x8xf32>
    %18 = arith.mulf %17, %14 : vector<64x8xf32>
    %19 = arith.select %16, %14, %18 : vector<64x8xi1>, vector<64x8xf32>
    %c0_12 = arith.constant 0 : index
    %c0_13 = arith.constant 0 : index
    %20 = vector.load %arg7[%c0_12, %c0_13] : memref<64x8xf32, #tpu.memory_space<vmem>>, vector<64x8xf32>
    tpu.vector_store %arg7[%c0_12, %c0_13], %19 {strides = array<i32>} : memref<64x8xf32, #tpu.memory_space<vmem>>, vector<64x8xf32>,
    return
  }
  func.func @transform_0(%arg0: i32) -> (i32, i32) {
    %c0_i32 = arith.constant 0 : i32
    %c0_i32_0 = arith.constant 0 : i32
    return %arg0, %c0_i32 : i32, i32
  }
  func.func @transform_1(%arg0: i32) -> (i32, i32) {
    %c0_i32 = arith.constant 0 : i32
    %c0_i32_0 = arith.constant 0 : i32
    return %arg0, %c0_i32 : i32, i32
  }
  func.func @transform_2(%arg0: i32) -> (i32, i32) {
    %c0_i32 = arith.constant 0 : i32
    %c0_i32_0 = arith.constant 0 : i32
    %c0_i32_1 = arith.constant 0 : i32
    return %c0_i32, %c0_i32_0 : i32, i32
  }
  func.func @transform_3(%arg0: i32) -> (i32, i32) {
    %c0_i32 = arith.constant 0 : i32
    %c0_i32_0 = arith.constant 0 : i32
    %c0_i32_1 = arith.constant 0 : i32
    return %c0_i32, %c0_i32_0 : i32, i32
  }
  func.func @transform_4(%arg0: i32) -> (i32, i32) {
    %c0_i32 = arith.constant 0 : i32
    %c0_i32_0 = arith.constant 0 : i32
    %c0_i32_1 = arith.constant 0 : i32
    return %c0_i32, %c0_i32_0 : i32, i32
  }
  func.func @transform_5(%arg0: i32) -> (i32, i32) {
    %c0_i32 = arith.constant 0 : i32
    %c0_i32_0 = arith.constant 0 : i32
    %c0_i32_1 = arith.constant 0 : i32
    return %c0_i32, %c0_i32_0 : i32, i32
  }
  func.func @transform_6(%arg0: i32) -> (i32, i32) {
    %c0_i32 = arith.constant 0 : i32
    %c0_i32_0 = arith.constant 0 : i32
    return %arg0, %c0_i32 : i32, i32
  }
}

</mosaic_0001>

<bundles_post_ra>
// kernel: basic_encode_block_forward.5
= control target key start
LH: loop header
LB: loop body
LE: loop exit
PB: predicated region body
PF: predicated region fallthrough
CT: control target
= control target key end

     0   :  { %s350_s12 = smov 0   ;;  %s394_s0 = inlined_call_operand.vmem [shape: f32[128,8], index: 0, kind: input, shape index: {}]   ;;  %s395_s1 = inlined_call_operand.vmem [shape: f32[1,8], index: 1, kind: input, shape index: {}]   ;;  %s396_s2 = inlined_call_operand.vmem [shape: f32[1,8], index: 2, kind: input, shape index: {}]   ;;  %s397_s3 = inlined_call_operand.vmem [shape: f32[128,8], index: 3, kind: output, shape index: {}]  }
   0x1 LB: > { %s301_s13 = sadd.s32 4294967295, %s328_s12   ;;  %p305_p0 = scmp.ge.s32.totalorder %s328_s12, 1  ;;  %s328_s12 = sphi %s350_s12, %s13_s12  }
   0x2   : > { %p138_p1 = scmp.lt.s32.totalorder %s328_s12, 3 }
   0x4   : > { %p139_p2 = pnand %p305_p0, %p138_p1 }
   0x5   : > { %s306_s14 = sshll.u32 (!%p139_p2), %s301_s13, 3  ;;  %v310_v0 = vld [vmem:[%s395_s1] ss:$0 sm:$0xff] (!%p139_p2)  ;;  %vm236_vm0 = vcmask (!%p139_p2), 64512  }
   0x6   : > { %142 = sbr.rel (%p139_p2) target bundleno = 32 (0x20), region = 32  ;;  %p163_p3 = scmp.lt.s32.totalorder (!%p139_p2), %s306_s14, 15  ;;  %v311_v1 = vld [vmem:[%s396_s2] ss:$0 sm:$0xff] (!%p139_p2) }
   0xd   : > { %s399_s14 = smov (!%p163_p3, %s306_s14), 15 }
   0xe   : > { %s307_s15 = sshll.u32 %s399_s14, 3 }
   0xf   : > { %s166_s20 = scalar_lea.vmem %s394_s0, %s307_s15  ;;  %s373_s25 = scalar_lea.vmem %s397_s3, %s307_s15 }
  0x10   : > { %v174_v2 = vld [vmem:[%s166_s20] sm:$0xff]  ;;  %v175_v3 = vld [vmem:[%s166_s20 + $0x8] sm:$0xff]  ;;  %v176_v4 = vld [vmem:[%s166_s20 + $0x10] sm:$0xff] }
  0x11   : > { %v189_v5 = vmul.f32 %v310_v0, %v174_v2  ;;  %v190_v6 = vmul.f32 %v310_v0, %v175_v3  ;;  %v191_v7 = vmul.f32 %v310_v0, %v176_v4  ;;  %v177_v8 = vld [vmem:[%s166_s20 + $0x18] sm:$0xff]  ;;  %v178_v9 = vld [vmem:[%s166_s20 + $0x20] sm:$0xff]  ;;  %v179_v10 = vld [vmem:[%s166_s20 + $0x28] sm:$0xff] }
  0x12   : > { %v192_v11 = vmul.f32 %v310_v0, %v177_v8  ;;  %v193_v12 = vmul.f32 %v310_v0, %v178_v9  ;;  %v194_v13 = vmul.f32 %v310_v0, %v179_v10  ;;  %v180_v14 = vld [vmem:[%s166_s20 + $0x30] sm:$0xff]  ;;  %v181_v15 = vld [vmem:[%s166_s20 + $0x38] sm:$0xff] }
  0x13   : > { %v204_v16 = vadd.f32 %v311_v1, %v189_v5  ;;  %v205_v17 = vadd.f32 %v311_v1, %v190_v6  ;;  %v206_v18 = vadd.f32 %v311_v1, %v191_v7  ;;  %v195_v19 = vmul.f32 %v310_v0, %v180_v14 }
  0x14   : > { %v207_v20 = vadd.f32 %v311_v1, %v192_v11  ;;  %v208_v21 = vadd.f32 %v311_v1, %v193_v12  ;;  %v209_v22 = vadd.f32 %v311_v1, %v194_v13  ;;  %v196_v23 = vmul.f32 %v310_v0, %v181_v15 }
  0x15   : > { %vm212_vm1 = vcmp.ge.f32.partialorder %v204_v16, 0.0  ;;  %v220_v24 = vmul.f32 0.01, %v204_v16  ;;  %vm213_vm2 = vcmp.ge.f32.partialorder %v205_v17, 0.0  ;;  %v221_v25 = vmul.f32 0.01, %v205_v17 }
  0x16   : > { %vm214_vm3 = vcmp.ge.f32.partialorder %v206_v18, 0.0  ;;  %v222_v26 = vmul.f32 0.01, %v206_v18  ;;  %vm215_vm4 = vcmp.ge.f32.partialorder %v207_v20, 0.0  ;;  %v223_v27 = vmul.f32 0.01, %v207_v20 }
  0x17   : > { %v228_v28 = vsel %vm212_vm1, %v204_v16, %v220_v24  ;;  %v229_v29 = vsel %vm213_vm2, %v205_v17, %v221_v25  ;;  %vm216_vm5 = vcmp.ge.f32.partialorder %v208_v21, 0.0  ;;  %v224_v30 = vmul.f32 0.01, %v208_v21 }
  0x18   : > { %237 = vst.msk [vmem:[%s373_s25] sm:$0xff] %vm236_vm0, %v228_v28  ;;  %238 = vst.msk [vmem:[%s373_s25 + $0x8] sm:$0xff] %vm236_vm0, %v229_v29  ;;  %v230_v31 = vsel %vm214_vm3, %v206_v18, %v222_v26  ;;  %v231_v32 = vsel %vm215_vm4, %v207_v20, %v223_v27  ;;  %vm217_vm6 = vcmp.ge.f32.partialorder %v209_v22, 0.0  ;;  %v225_v33 = vmul.f32 0.01, %v209_v22 }
  0x19   : > { %239 = vst.msk [vmem:[%s373_s25 + $0x10] sm:$0xff] %vm236_vm0, %v230_v31  ;;  %240 = vst.msk [vmem:[%s373_s25 + $0x18] sm:$0xff] %vm236_vm0, %v231_v32  ;;  %v232_v34 = vsel %vm216_vm5, %v208_v21, %v224_v30  ;;  %v210_v35 = vadd.f32 %v311_v1, %v195_v19  ;;  %v211_v36 = vadd.f32 %v311_v1, %v196_v23 }
  0x1a   : > { %241 = vst.msk [vmem:[%s373_s25 + $0x20] sm:$0xff] %vm236_vm0, %v232_v34  ;;  %v233_v37 = vsel %vm217_vm6, %v209_v22, %v225_v33 }
  0x1b   : > { %242 = vst.msk [vmem:[%s373_s25 + $0x28] sm:$0xff] %vm236_vm0, %v233_v37  ;;  %vm218_vm7 = vcmp.ge.f32.partialorder %v210_v35, 0.0  ;;  %v226_v38 = vmul.f32 0.01, %v210_v35  ;;  %vm219_vm8 = vcmp.ge.f32.partialorder %v211_v36, 0.0 }
  0x1c   : > { %v227_v39 = vmul.f32 0.01, %v211_v36 }
  0x1d   : > { %v234_v40 = vsel %vm218_vm7, %v210_v35, %v226_v38 }
  0x1e   : > { %v235_v41 = vsel %vm219_vm8, %v211_v36, %v227_v39  ;;  %243 = vst.msk [vmem:[%s373_s25 + $0x30] sm:$0xff] %vm236_vm0, %v234_v40 }
  0x1f   : > { %244 = vst.msk [vmem:[%s373_s25 + $0x38] sm:$0xff] %vm236_vm0, %v235_v41 }
  0x20 PF: > { %s13_s12 = sadd.s32 1, %s328_s12  }
  0x21   : > { %p10_p4 = scmp.ge.s32.totalorder %s13_s12, 4  }
  0x23   :  { %12 = sbr.rel (!%p10_p4) target bundleno = 1 (0x1), region = 62 }

// kernel: basic_encode_block_forward.6
= control target key start
LH: loop header
LB: loop body
LE: loop exit
PB: predicated region body
PF: predicated region fallthrough
CT: control target
= control target key end

     0   :  { %s620_s15 = smov 0   ;;  %s738_s0 = inlined_call_operand.vmem [shape: f32[128,72], index: 0, kind: input, shape index: {}]   ;;  %s739_s1 = inlined_call_operand.vmem [shape: f32[72,8], index: 1, kind: input, shape index: {}]   ;;  %s740_s2 = inlined_call_operand.vmem [shape: f32[128,8], index: 2, kind: output, shape index: {0}]   ;;  %s741_s3 = inlined_call_operand.vmem [shape: f32[1,8], index: 3, kind: output, shape index: {1}]   ;;  %s742_s4 = inlined_call_operand.vmem [shape: f32[1,8], index: 4, kind: output, shape index: {2}]  }
   0x1 LB: > { %s484_s16 = sadd.s32 4294967295, %s592_s15   ;;  %p488_p0 = scmp.ge.s32.totalorder %s592_s15, 1  ;;  %s592_s15 = sphi %s620_s15, %s15_s15  }
   0x2   : > { %p158_p1 = scmp.lt.s32.totalorder %s592_s15, 3 }
   0x4   : > { %p159_p2 = pnand %p488_p0, %p158_p1 }
   0x5   : > { %v204_v0 = vld [vmem:[%s739_s1] sm:$0xff] (!%p159_p2)  ;;  %v205_v1 = vld [vmem:[%s739_s1 + $0x8] sm:$0xff] (!%p159_p2)  ;;  %v206_v2 = vld [vmem:[%s739_s1 + $0x10] sm:$0xff] (!%p159_p2)  ;;  %s489_s23 = sshll.u32 (!%p159_p2), %s484_s16, 3  ;;  %vm213_vm0 = vcmask (!%p159_p2), 588800   ;;  %p501_p4 = scmp.ne.s32.totalorder (!%p159_p2), %s484_s16, 0 }
   0x6   : > { %162 = sbr.rel (%p159_p2) target bundleno = 277 (0x115), region = 28  ;;  %v551_v3 = vpack.c.bf16 (!%p159_p2), %v205_v1, %v204_v0  ;;  %v207_v4 = vld [vmem:[%s739_s1 + $0x18] sm:$0xff] (!%p159_p2)  ;;  %p185_p3 = scmp.lt.s32.totalorder (!%p159_p2), %s489_s23, 15  ;;  %v208_v6 = vld [vmem:[%s739_s1 + $0x20] sm:$0xff] (!%p159_p2)  ;;  %v209_v7 = vld [vmem:[%s739_s1 + $0x28] sm:$0xff] (!%p159_p2) }
   0x7   : > { %v555_v5 = vpack.c.bf16 (!%p159_p2), %v207_v4, %v206_v2  ;;  %v559_v8 = vpack.c.bf16 (!%p159_p2), %v209_v7, %v208_v6  ;;  %v210_v9 = vld [vmem:[%s739_s1 + $0x30] sm:$0xff] (!%p159_p2)  ;;  %v211_v10 = vld [vmem:[%s739_s1 + $0x38] sm:$0xff] (!%p159_p2)  ;;  %v212_v14 = vld [vmem:[%s739_s1 + $0x40] sm:$0xff] (!%p159_p2) }
   0x8   : > { %552 = vmatprep.subr.bf16.mxu0 (!%p159_p2), %v551_v3  ;;  %567 = vmatprep.subr.bf16.mxu1 (!%p159_p2), %v551_v3  ;;  %v563_v13 = vpack.c.bf16 (!%p159_p2), %v211_v10, %v210_v9 }
   0x9   : > { %554 = vmatpush3.bf16.msra.mxu0 (!%p159_p2), %v551_v3  ;;  %572 = vmatpush3.bf16.msra.mxu1 (!%p159_p2), %v551_v3 }
   0xa   : > { %556 = vmatprep.subr.bf16.mxu0 (!%p159_p2), %v555_v5  ;;  %568 = vmatprep.subr.bf16.mxu1 (!%p159_p2), %v555_v5 }
   0xd   : > { %s744_s23 = smov (!%p185_p3, %s489_s23), 15  ;;  %558 = vmatpush3.bf16.msra.mxu0 %v555_v5  ;;  %573 = vmatpush3.bf16.msra.mxu1 %v555_v5  ;;  %vm347_vm1 = vcmask (!%p501_p4), 57344   ;;  %v594_v29 = vmov (!%p501_p4), 0.0  }
   0xe   : > { %s490_s30 = sshll.u32 %s744_s23, 3  ;;  %560 = vmatprep.subr.bf16.mxu0 %v559_v8  ;;  %569 = vmatprep.subr.bf16.mxu1 %v559_v8  ;;  %348 = vst.msk [vmem:[%s741_s3] sm:$0x1] (!%p501_p4), %vm347_vm1, %v594_v29  ;;  %349 = vst.msk [vmem:[%s742_s4] sm:$0x1] (!%p501_p4), %vm347_vm1, %v594_v29 }
   0xf   : > { %s657_s11 = scalar_lea.vmem %s738_s0, %s490_s30  ;;  %s662_s14 = scalar_lea.vmem %s740_s2, %s490_s30 }
  0x10   : > { %v196_v11 = vld [vmem:[%s657_s11] sm:$0xff]  ;;  %v197_v15 = vld [vmem:[%s657_s11 + $0x8] sm:$0xff]  ;;  %v198_v17 = vld [vmem:[%s657_s11 + $0x10] sm:$0xff] }
  0x11   : > { %v200_v12 = vld [vmem:[%s657_s11 + $0x20] sm:$0xff]  ;;  %539 = vmatprep.mubr.msk.f32.mxu0 %vm213_vm0, %v196_v11  ;;  %562 = vmatpush3.bf16.msra.mxu0 %v559_v8  ;;  %v201_v16 = vld [vmem:[%s657_s11 + $0x28] sm:$0xff]  ;;  %v202_v18 = vld [vmem:[%s657_s11 + $0x30] sm:$0xff] }
  0x12   : > { %545 = vmatprep.mubr.msk.f32.mxu1 %vm213_vm0, %v200_v12  ;;  %574 = vmatpush3.bf16.msra.mxu1 %v559_v8  ;;  %v199_v19 = vld [vmem:[%s657_s11 + $0x18] sm:$0xff] }
  0x13   : > { %564 = vmatprep.subr.bf16.mxu0 %v563_v13  ;;  %570 = vmatprep.subr.bf16.mxu1 %v563_v13  ;;  %v203_v20 = vld [vmem:[%s657_s11 + $0x38] sm:$0xff] }
  0x15   : > { %566 = vmatpush3.bf16.msra.mxu0 %v563_v13 }
  0x16   : > { %575 = vmatpush3.bf16.msra.mxu1 %v563_v13  ;;  %537 = vmatprep.subr.mxu0 %v212_v14 }
  0x17   : > { %571 = vmatprep.subr.mxu1 %v212_v14 }
  0x19   : > { %538 = vmatpush3.msra.mxu0 %v212_v14 }
  0x1a   : > { %576 = vmatpush3.msra.mxu1 %v212_v14  ;;  %540 = vmatmul.mubr.msk.f32.vlgmr.msra.gmra.mrb[0].mxu0 %vm213_vm0, %v197_v15 }
  0x1b   : > { %546 = vmatmul.mubr.msk.f32.vlgmr.msra.gmra.mrb[0].mxu1 %vm213_vm0, %v201_v16  ;;  %542 = vmatprep.mubr.msk.f32.mxu0 %vm213_vm0, %v198_v17 }
  0x1c   : > { %548 = vmatprep.mubr.msk.f32.mxu1 %vm213_vm0, %v202_v18 }
  0x1e   : > { %543 = vmatmul.mubr.msk.f32.gmra.mrb[2].mxu0 %vm213_vm0, %v199_v19 }
  0x1f   : > { %549 = vmatmul.mubr.msk.f32.gmra.mrb[2].mxu1 %vm213_vm0, %v203_v20 }
  0xed   : > { %v541_v21 = vpop.f32.mrb[0].mxu0  ;;  %346 = sbr.rel (%p501_p4) target bundleno = 244 (0xf4), region = 32 }
  0xee   : > { %v547_v22 = vpop.f32.mrb[0].mxu1  ;;  %v304_v23 = vpop.f32.mrb[1].mxu0 }
  0xef   : > { %v324_v24 = vpop.f32.mrb[1].mxu1 }
  0xf1   : > { %v544_v25 = vpop.f32.mrb[2].mxu0 }
  0xf2   : > { %v550_v26 = vpop.f32.mrb[2].mxu1  ;;  %v314_v27 = vpop.f32.mrb[3].mxu0 }
  0xf3   : > { %v334_v28 = vpop.f32.mrb[3].mxu1 }
  0xf4 PF: > { %vm351_vm2 = vcmask 64512   ;;  %v377_v30 = vmul.f32 %v304_v23, %v304_v23  ;;  %v378_v34 = vmul.f32 %v541_v21, %v541_v21  ;;  %v379_v37 = vmul.f32 %v314_v27, %v314_v27  ;;  %v350_v12 = vld [vmem:[%s741_s3] sm:$0x1] }
  0xf5   : > { %v352_v31 = vsel %vm351_vm2, %v304_v23, 0.0  ;;  %v353_v32 = vsel %vm351_vm2, %v541_v21, 0.0  ;;  %v355_v33 = vsel %vm351_vm2, %v314_v27, 0.0  ;;  %408 = vst.msk [vmem:[%s662_s14] sm:$0xff] %vm351_vm2, %v304_v23  ;;  %409 = vst.msk [vmem:[%s662_s14 + $0x8] sm:$0xff] %vm351_vm2, %v541_v21  ;;  %v357_v36 = vsel %vm351_vm2, %v544_v25, 0.0 }
  0xf6   : > { %410 = vst.msk [vmem:[%s662_s14 + $0x10] sm:$0xff] %vm351_vm2, %v314_v27  ;;  %411 = vst.msk [vmem:[%s662_s14 + $0x18] sm:$0xff] %vm351_vm2, %v544_v25  ;;  %v354_v35 = vadd.f32 %v353_v32, %v352_v31  ;;  %v380_v38 = vmul.f32 %v544_v25, %v544_v25  ;;  %v359_v40 = vsel %vm351_vm2, %v324_v24, 0.0  ;;  %v381_v41 = vmul.f32 %v324_v24, %v324_v24  ;;  %v376_v17 = vld [vmem:[%s742_s4] sm:$0x1] }
  0xf7   : > { %412 = vst.msk [vmem:[%s662_s14 + $0x20] sm:$0xff] %vm351_vm2, %v324_v24  ;;  %413 = vst.msk [vmem:[%s662_s14 + $0x28] sm:$0xff] %vm351_vm2, %v547_v22  ;;  %v385_v42 = vsel %vm351_vm2, %v377_v30, 0.0  ;;  %v386_v43 = vsel %vm351_vm2, %v378_v34, 0.0  ;;  %v388_v44 = vsel %vm351_vm2, %v379_v37, 0.0  ;;  %v361_v47 = vsel %vm351_vm2, %v547_v22, 0.0 }
  0xf8   : > { %414 = vst.msk [vmem:[%s662_s14 + $0x30] sm:$0xff] %vm351_vm2, %v334_v28  ;;  %415 = vst.msk [vmem:[%s662_s14 + $0x38] sm:$0xff] %vm351_vm2, %v550_v26  ;;  %v356_v39 = vadd.f32 %v355_v33, %v354_v35  ;;  %v387_v46 = vadd.f32 %v386_v43, %v385_v42  ;;  %v382_v48 = vmul.f32 %v547_v22, %v547_v22  ;;  %v390_v49 = vsel %vm351_vm2, %v380_v38, 0.0 }
  0xf9   : > { %v363_v52 = vsel %vm351_vm2, %v334_v28, 0.0  ;;  %v383_v53 = vmul.f32 %v334_v28, %v334_v28  ;;  %v392_v54 = vsel %vm351_vm2, %v381_v41, 0.0  ;;  %v365_v57 = vsel %vm351_vm2, %v550_v26, 0.0 }
  0xfa   : > { %v358_v45 = vadd.f32 %v357_v36, %v356_v39  ;;  %v389_v51 = vadd.f32 %v388_v44, %v387_v46  ;;  %v384_v58 = vmul.f32 %v550_v26, %v550_v26  ;;  %v394_v59 = vsel %vm351_vm2, %v382_v48, 0.0 }
  0xfb   : > { %v396_v62 = vsel %vm351_vm2, %v383_v53, 0.0  ;;  %vm374_vm3 = vcmask 57344  }
  0xfc   : > { %v360_v50 = vadd.f32 %v359_v40, %v358_v45  ;;  %v391_v56 = vadd.f32 %v390_v49, %v389_v51  ;;  %v398_v1 = vsel %vm351_vm2, %v384_v58, 0.0 }
  0xfe   : > { %v362_v55 = vadd.f32 %v361_v47, %v360_v50  ;;  %v393_v61 = vadd.f32 %v392_v54, %v391_v56 }
 0x100   : > { %v364_v60 = vadd.f32 %v363_v52, %v362_v55  ;;  %v395_v0 = vadd.f32 %v394_v59, %v393_v61 }
 0x102   : > { %v366_v63 = vadd.f32 %v365_v57, %v364_v60  ;;  %v397_v3 = vadd.f32 %v396_v62, %v395_v0 }
 0x104   : > { %v367_v2 = vrot.slane %v366_v63, 4  ;;  %v399_v5 = vadd.f32 %v398_v1, %v397_v3 }
 0x106   : > { %v368_v4 = vadd.f32 %v367_v2, %v366_v63  ;;  %v400_v7 = vrot.slane %v399_v5, 4 }
 0x108   : > { %v369_v6 = vrot.slane %v368_v4, 2  ;;  %v401_v9 = vadd.f32 %v400_v7, %v399_v5 }
 0x10a   : > { %v370_v8 = vadd.f32 %v369_v6, %v368_v4  ;;  %v402_v11 = vrot.slane %v401_v9, 2 }
 0x10c   : > { %v371_v10 = vrot.slane %v370_v8, 1  ;;  %v403_v14 = vadd.f32 %v402_v11, %v401_v9 }
 0x10e   : > { %v372_v13 = vadd.f32 %v371_v10, %v370_v8  ;;  %v404_v16 = vrot.slane %v403_v14, 1 }
 0x110   : > { %v373_v15 = vadd.f32 %v372_v13, %v350_v12  ;;  %v405_v18 = vadd.f32 %v404_v16, %v403_v14 }
 0x112   : > { %375 = vst.msk [vmem:[%s741_s3] sm:$0x1] %vm374_vm3, %v373_v15  ;;  %v406_v19 = vadd.f32 %v405_v18, %v376_v17 }
 0x114   : > { %407 = vst.msk [vmem:[%s742_s4] sm:$0x1] %vm374_vm3, %v406_v19 }
 0x115 PF: > { %s15_s15 = sadd.s32 1, %s592_s15  }
 0x116   : > { %p12_p5 = scmp.ge.s32.totalorder %s15_s15, 4  }
 0x118   :  { %14 = sbr.rel (!%p12_p5) target bundleno = 1 (0x1), region = 78 }

// kernel: basic_encode_block_forward.4
= control target key start
LH: loop header
LB: loop body
LE: loop exit
PB: predicated region body
PF: predicated region fallthrough
CT: control target
= control target key end

     0   :  { %s597_s15 = smov 0   ;;  %s697_s0 = inlined_call_operand.vmem [shape: f32[128,36], index: 0, kind: input, shape index: {}]   ;;  %s698_s1 = inlined_call_operand.vmem [shape: f32[36,16], index: 1, kind: input, shape index: {}]   ;;  %s699_s2 = inlined_call_operand.vmem [shape: f32[128,16], index: 2, kind: output, shape index: {0}]   ;;  %s700_s3 = inlined_call_operand.vmem [shape: f32[1,16], index: 3, kind: output, shape index: {1}]   ;;  %s701_s4 = inlined_call_operand.vmem [shape: f32[1,16], index: 4, kind: output, shape index: {2}]  }
   0x1 LB: > { %s484_s16 = sadd.s32 4294967295, %s569_s15   ;;  %p488_p0 = scmp.ge.s32.totalorder %s569_s15, 1  ;;  %s569_s15 = sphi %s597_s15, %s15_s15  }
   0x2   : > { %p158_p1 = scmp.lt.s32.totalorder %s569_s15, 3 }
   0x4   : > { %p159_p2 = pnand %p488_p0, %p158_p1 }
   0x5   : > { %v204_v0 = vld [vmem:[%s698_s1] sm:$0xff] (!%p159_p2)  ;;  %v205_v1 = vld [vmem:[%s698_s1 + $0x8] sm:$0xff] (!%p159_p2)  ;;  %v206_v2 = vld [vmem:[%s698_s1 + $0x10] sm:$0xff] (!%p159_p2)  ;;  %s489_s23 = sshll.u32 (!%p159_p2), %s484_s16, 3  ;;  %vm234_vm0 = vcmask (!%p159_p2), 1043456   ;;  %vm209_vm1 = vcmask (!%p159_p2), 293888  }
   0x6   : > { %162 = sbr.rel (%p159_p2) target bundleno = 269 (0x10d), region = 28  ;;  %v540_v3 = vpack.c.bf16 (!%p159_p2), %v205_v1, %v204_v0  ;;  %v207_v4 = vld [vmem:[%s698_s1 + $0x18] sm:$0xff] (!%p159_p2)  ;;  %p185_p3 = scmp.lt.s32.totalorder (!%p159_p2), %s489_s23, 15  ;;  %v208_v6 = vld [vmem:[%s698_s1 + $0x20] sm:$0xf] (!%p159_p2) }
   0x7   : > { %v544_v5 = vpack.c.bf16 (!%p159_p2), %v207_v4, %v206_v2  ;;  %p502_p4 = scmp.ne.s32.totalorder (!%p159_p2), %s484_s16, 0 }
   0x8   : > { %541 = vmatprep.subr.bf16.mxu0 (!%p159_p2), %v540_v3  ;;  %548 = vmatprep.subr.bf16.mxu1 (!%p159_p2), %v540_v3 }
   0x9   : > { %543 = vmatpush3.bf16.msra.mxu0 (!%p159_p2), %v540_v3  ;;  %551 = vmatpush3.bf16.msra.mxu1 (!%p159_p2), %v540_v3 }
   0xa   : > { %545 = vmatprep.subr.bf16.mxu0 (!%p159_p2), %v544_v5  ;;  %549 = vmatprep.subr.bf16.mxu1 (!%p159_p2), %v544_v5 }
   0xd   : > { %s703_s23 = smov (!%p185_p3, %s489_s23), 15  ;;  %547 = vmatpush3.bf16.msra.mxu0 %v544_v5  ;;  %552 = vmatpush3.bf16.msra.mxu1 %v544_v5  ;;  %vm347_vm2 = vcmask (!%p502_p4), 122880   ;;  %v571_v23 = vmov (!%p502_p4), 0.0  }
   0xe   : > { %s490_s26 = sshll.u32 %s703_s23, 3  ;;  %526 = vmatprep.subr.msk.mxu0 %vm234_vm0, %v208_v6  ;;  %550 = vmatprep.subr.msk.mxu1 %vm234_vm0, %v208_v6  ;;  %348 = vst.msk [vmem:[%s700_s3] sm:$0x1] (!%p502_p4), %vm347_vm2, %v571_v23  ;;  %349 = vst.msk [vmem:[%s701_s4] sm:$0x1] (!%p502_p4), %vm347_vm2, %v571_v23 }
   0xf   : > { %s188_s5 = scalar_lea.vmem %s697_s0, %s490_s26  ;;  %s628_s8 = scalar_lea.vmem %s699_s2, %s490_s26 }
  0x10   : > { %v196_v7 = vld [vmem:[%s188_s5] sm:$0xff]  ;;  %v197_v9 = vld [vmem:[%s188_s5 + $0x8] sm:$0xff]  ;;  %v198_v11 = vld [vmem:[%s188_s5 + $0x10] sm:$0xff] }
  0x11   : > { %v200_v8 = vld [vmem:[%s188_s5 + $0x20] sm:$0xff]  ;;  %528 = vmatprep.mubr.msk.f32.mxu0 %vm209_vm1, %v196_v7  ;;  %v201_v10 = vld [vmem:[%s188_s5 + $0x28] sm:$0xff]  ;;  %v202_v12 = vld [vmem:[%s188_s5 + $0x30] sm:$0xff]  ;;  %527 = vmatpush3.msk.msra.mxu0 %vm234_vm0, %v208_v6 }
  0x12   : > { %534 = vmatprep.mubr.msk.f32.mxu1 %vm209_vm1, %v200_v8  ;;  %553 = vmatpush3.msk.msra.mxu1 %vm234_vm0, %v208_v6  ;;  %v199_v13 = vld [vmem:[%s188_s5 + $0x18] sm:$0xff] }
  0x13   : > { %529 = vmatmul.mubr.msk.f32.vlgmr.msra.gmra.mrb[0].mxu0 %vm209_vm1, %v197_v9  ;;  %535 = vmatmul.mubr.msk.f32.vlgmr.msra.gmra.mrb[0].mxu1 %vm209_vm1, %v201_v10  ;;  %v203_v14 = vld [vmem:[%s188_s5 + $0x38] sm:$0xff] }
  0x14   : > { %531 = vmatprep.mubr.msk.f32.mxu0 %vm209_vm1, %v198_v11  ;;  %537 = vmatprep.mubr.msk.f32.mxu1 %vm209_vm1, %v202_v12 }
  0x17   : > { %532 = vmatmul.mubr.msk.f32.gmra.mrb[2].mxu0 %vm209_vm1, %v199_v13  ;;  %538 = vmatmul.mubr.msk.f32.gmra.mrb[2].mxu1 %vm209_vm1, %v203_v14 }
  0xe5   : > { %346 = sbr.rel (%p502_p4) target bundleno = 236 (0xec), region = 32 }
  0xe6   : > { %v530_v15 = vpop.f32.mrb[0].mxu0  ;;  %v536_v16 = vpop.f32.mrb[0].mxu1 }
  0xe7   : > { %v304_v17 = vpop.f32.mrb[1].mxu0  ;;  %v324_v18 = vpop.f32.mrb[1].mxu1 }
  0xea   : > { %v533_v19 = vpop.f32.mrb[2].mxu0  ;;  %v539_v20 = vpop.f32.mrb[2].mxu1 }
  0xeb   : > { %v314_v21 = vpop.f32.mrb[3].mxu0  ;;  %v334_v22 = vpop.f32.mrb[3].mxu1 }
  0xec PF: > { %vm351_vm3 = vcmask 130048   ;;  %v377_v24 = vmul.f32 %v304_v17, %v304_v17  ;;  %v378_v28 = vmul.f32 %v530_v15, %v530_v15  ;;  %v379_v31 = vmul.f32 %v314_v21, %v314_v21  ;;  %v350_v6 = vld [vmem:[%s700_s3] sm:$0x1] }
  0xed   : > { %v352_v25 = vsel %vm351_vm3, %v304_v17, 0.0  ;;  %v353_v26 = vsel %vm351_vm3, %v530_v15, 0.0  ;;  %v355_v27 = vsel %vm351_vm3, %v314_v21, 0.0  ;;  %408 = vst.msk [vmem:[%s628_s8] sm:$0xff] %vm351_vm3, %v304_v17  ;;  %409 = vst.msk [vmem:[%s628_s8 + $0x8] sm:$0xff] %vm351_vm3, %v530_v15  ;;  %v357_v30 = vsel %vm351_vm3, %v533_v19, 0.0 }
  0xee   : > { %410 = vst.msk [vmem:[%s628_s8 + $0x10] sm:$0xff] %vm351_vm3, %v314_v21  ;;  %411 = vst.msk [vmem:[%s628_s8 + $0x18] sm:$0xff] %vm351_vm3, %v533_v19  ;;  %v354_v29 = vadd.f32 %v353_v26, %v352_v25  ;;  %v380_v32 = vmul.f32 %v533_v19, %v533_v19  ;;  %v359_v34 = vsel %vm351_vm3, %v324_v18, 0.0  ;;  %v381_v35 = vmul.f32 %v324_v18, %v324_v18  ;;  %v376_v11 = vld [vmem:[%s701_s4] sm:$0x1] }
  0xef   : > { %412 = vst.msk [vmem:[%s628_s8 + $0x20] sm:$0xff] %vm351_vm3, %v324_v18  ;;  %413 = vst.msk [vmem:[%s628_s8 + $0x28] sm:$0xff] %vm351_vm3, %v536_v16  ;;  %v385_v36 = vsel %vm351_vm3, %v377_v24, 0.0  ;;  %v386_v37 = vsel %vm351_vm3, %v378_v28, 0.0  ;;  %v388_v38 = vsel %vm351_vm3, %v379_v31, 0.0  ;;  %v361_v41 = vsel %vm351_vm3, %v536_v16, 0.0 }
  0xf0   : > { %414 = vst.msk [vmem:[%s628_s8 + $0x30] sm:$0xff] %vm351_vm3, %v334_v22  ;;  %415 = vst.msk [vmem:[%s628_s8 + $0x38] sm:$0xff] %vm351_vm3, %v539_v20  ;;  %v356_v33 = vadd.f32 %v355_v27, %v354_v29  ;;  %v387_v40 = vadd.f32 %v386_v37, %v385_v36  ;;  %v382_v42 = vmul.f32 %v536_v16, %v536_v16  ;;  %v390_v43 = vsel %vm351_vm3, %v380_v32, 0.0 }
  0xf1   : > { %v363_v46 = vsel %vm351_vm3, %v334_v22, 0.0  ;;  %v383_v47 = vmul.f32 %v334_v22, %v334_v22  ;;  %v392_v48 = vsel %vm351_vm3, %v381_v35, 0.0  ;;  %v365_v51 = vsel %vm351_vm3, %v539_v20, 0.0 }
  0xf2   : > { %v358_v39 = vadd.f32 %v357_v30, %v356_v33  ;;  %v389_v45 = vadd.f32 %v388_v38, %v387_v40  ;;  %v384_v52 = vmul.f32 %v539_v20, %v539_v20  ;;  %v394_v53 = vsel %vm351_vm3, %v382_v42, 0.0 }
  0xf3   : > { %v396_v56 = vsel %vm351_vm3, %v383_v47, 0.0  ;;  %vm374_vm4 = vcmask 122880  }
  0xf4   : > { %v360_v44 = vadd.f32 %v359_v34, %v358_v39  ;;  %v391_v50 = vadd.f32 %v390_v43, %v389_v45  ;;  %v398_v59 = vsel %vm351_vm3, %v384_v52, 0.0 }
  0xf6   : > { %v362_v49 = vadd.f32 %v361_v41, %v360_v44  ;;  %v393_v55 = vadd.f32 %v392_v48, %v391_v50 }
  0xf8   : > { %v364_v54 = vadd.f32 %v363_v46, %v362_v49  ;;  %v395_v58 = vadd.f32 %v394_v53, %v393_v55 }
  0xfa   : > { %v366_v57 = vadd.f32 %v365_v51, %v364_v54  ;;  %v397_v61 = vadd.f32 %v396_v56, %v395_v58 }
  0xfc   : > { %v367_v60 = vrot.slane %v366_v57, 4  ;;  %v399_v63 = vadd.f32 %v398_v59, %v397_v61 }
  0xfe   : > { %v368_v62 = vadd.f32 %v367_v60, %v366_v57  ;;  %v400_v1 = vrot.slane %v399_v63, 4 }
 0x100   : > { %v369_v0 = vrot.slane %v368_v62, 2  ;;  %v401_v3 = vadd.f32 %v400_v1, %v399_v63 }
 0x102   : > { %v370_v2 = vadd.f32 %v369_v0, %v368_v62  ;;  %v402_v5 = vrot.slane %v401_v3, 2 }
 0x104   : > { %v371_v4 = vrot.slane %v370_v2, 1  ;;  %v403_v8 = vadd.f32 %v402_v5, %v401_v3 }
 0x106   : > { %v372_v7 = vadd.f32 %v371_v4, %v370_v2  ;;  %v404_v10 = vrot.slane %v403_v8, 1 }
 0x108   : > { %v373_v9 = vadd.f32 %v372_v7, %v350_v6  ;;  %v405_v12 = vadd.f32 %v404_v10, %v403_v8 }
 0x10a   : > { %375 = vst.msk [vmem:[%s700_s3] sm:$0x1] %vm374_vm4, %v373_v9  ;;  %v406_v13 = vadd.f32 %v405_v12, %v376_v11 }
 0x10c   : > { %407 = vst.msk [vmem:[%s701_s4] sm:$0x1] %vm374_vm4, %v406_v13 }
 0x10d PF: > { %s15_s15 = sadd.s32 1, %s569_s15  }
 0x10e   : > { %p12_p5 = scmp.ge.s32.totalorder %s15_s15, 4  }
 0x110   :  { %14 = sbr.rel (!%p12_p5) target bundleno = 1 (0x1), region = 78 }

// kernel: basic_encode_block_forward.7
= control target key start
LH: loop header
LB: loop body
LE: loop exit
PB: predicated region body
PF: predicated region fallthrough
CT: control target
= control target key end

     0   :  { %s530_s21 = smov 0   ;;  %s645_s0 = inlined_call_operand.vmem [shape: f32[128,8], index: 0, kind: input, shape index: {}]   ;;  %s646_s1 = inlined_call_operand.vmem [shape: f32[128,8], index: 1, kind: input, shape index: {}]   ;;  %s647_s2 = inlined_call_operand.vmem [shape: f32[1,8], index: 2, kind: input, shape index: {}]   ;;  %s648_s3 = inlined_call_operand.vmem [shape: f32[1,8], index: 3, kind: input, shape index: {}]   ;;  %s649_s4 = inlined_call_operand.vmem [shape: f32[1,8], index: 4, kind: input, shape index: {}]   ;;  %s650_s5 = inlined_call_operand.vmem [shape: f32[1,8], index: 5, kind: input, shape index: {}]   ;;  %s651_s6 = inlined_call_operand.vmem [shape: f32[128,8], index: 6, kind: output, shape index: {}]  }
   0x1 LB: > { %s462_s22 = sadd.s32 4294967295, %s493_s21   ;;  %p466_p0 = scmp.ge.s32.totalorder %s493_s21, 1  ;;  %s493_s21 = sphi %s530_s21, %s16_s21  }
   0x2   : > { %p224_p1 = scmp.lt.s32.totalorder %s493_s21, 3 }
   0x4   : > { %p225_p2 = pnand %p466_p0, %p224_p1 }
   0x5   : > { %s467_s23 = sshll.u32 (!%p225_p2), %s462_s22, 3  ;;  %v543_v0 = vld [vmem:[%s647_s2] ss:$0 sm:$0xff] (!%p225_p2)  ;;  %vm385_vm0 = vcmask (!%p225_p2), 64512  }
   0x6   : > { %228 = sbr.rel (%p225_p2) target bundleno = 39 (0x27), region = 44  ;;  %p260_p3 = scmp.lt.s32.totalorder (!%p225_p2), %s467_s23, 15  ;;  %v548_v1 = vld [vmem:[%s649_s4] ss:$0 sm:$0xff] (!%p225_p2) }
   0x7   : > { %v565_v2 = vld [vmem:[%s648_s3] ss:$0 sm:$0xff] (!%p225_p2) }
   0x8   : > { %v570_v3 = vld [vmem:[%s650_s5] ss:$0 sm:$0xff] (!%p225_p2) }
   0xd   : > { %s653_s23 = smov (!%p260_p3, %s467_s23), 15 }
   0xe   : > { %s538_s24 = sshll.u32 %s653_s23, 3 }
   0xf   : > { %s554_s7 = scalar_lea.vmem %s645_s0, %s538_s24  ;;  %s560_s10 = scalar_lea.vmem %s646_s1, %s538_s24 }
  0x10   : > { %v277_v4 = vld [vmem:[%s554_s7] sm:$0xff]  ;;  %v278_v6 = vld [vmem:[%s554_s7 + $0x8] sm:$0xff]  ;;  %v279_v11 = vld [vmem:[%s554_s7 + $0x10] sm:$0xff]  ;;  %s606_s17 = scalar_lea.vmem %s651_s6, %s538_s24 }
  0x11   : > { %v315_v5 = vld [vmem:[%s560_s10] sm:$0xff]  ;;  %v292_v7 = vmul.f32 %v543_v0, %v277_v4  ;;  %v293_v9 = vmul.f32 %v543_v0, %v278_v6  ;;  %v316_v10 = vld [vmem:[%s560_s10 + $0x8] sm:$0xff]  ;;  %v317_v12 = vld [vmem:[%s560_s10 + $0x10] sm:$0xff]  ;;  %v294_v14 = vmul.f32 %v543_v0, %v279_v11 }
  0x12   : > { %v330_v8 = vmul.f32 %v548_v1, %v315_v5  ;;  %v331_v13 = vmul.f32 %v548_v1, %v316_v10  ;;  %v332_v15 = vmul.f32 %v548_v1, %v317_v12  ;;  %v280_v16 = vld [vmem:[%s554_s7 + $0x18] sm:$0xff]  ;;  %v281_v18 = vld [vmem:[%s554_s7 + $0x20] sm:$0xff]  ;;  %v282_v24 = vld [vmem:[%s554_s7 + $0x28] sm:$0xff] }
  0x13   : > { %v318_v17 = vld [vmem:[%s560_s10 + $0x18] sm:$0xff]  ;;  %v307_v19 = vadd.f32 %v565_v2, %v292_v7  ;;  %v308_v21 = vadd.f32 %v565_v2, %v293_v9  ;;  %v295_v22 = vmul.f32 %v543_v0, %v280_v16  ;;  %v319_v23 = vld [vmem:[%s560_s10 + $0x20] sm:$0xff]  ;;  %v309_v26 = vadd.f32 %v565_v2, %v294_v14  ;;  %v320_v40 = vld [vmem:[%s560_s10 + $0x28] sm:$0xff] }
  0x14   : > { %v345_v20 = vadd.f32 %v570_v3, %v330_v8  ;;  %v346_v25 = vadd.f32 %v570_v3, %v331_v13  ;;  %v347_v27 = vadd.f32 %v570_v3, %v332_v15  ;;  %v333_v28 = vmul.f32 %v548_v1, %v318_v17  ;;  %v283_v41 = vld [vmem:[%s554_s7 + $0x30] sm:$0xff]  ;;  %v284_v49 = vld [vmem:[%s554_s7 + $0x38] sm:$0xff] }
  0x15   : > { %v310_v30 = vadd.f32 %v565_v2, %v295_v22  ;;  %v296_v31 = vmul.f32 %v543_v0, %v281_v18  ;;  %v334_v32 = vmul.f32 %v548_v1, %v319_v23  ;;  %v297_v36 = vmul.f32 %v543_v0, %v282_v24  ;;  %v321_v48 = vld [vmem:[%s560_s10 + $0x30] sm:$0xff]  ;;  %v322_v54 = vld [vmem:[%s560_s10 + $0x38] sm:$0xff] }
  0x16   : > { %v353_v29 = vadd.f32 %v345_v20, %v307_v19  ;;  %v354_v33 = vadd.f32 %v346_v25, %v308_v21  ;;  %v355_v34 = vadd.f32 %v347_v27, %v309_v26  ;;  %v348_v35 = vadd.f32 %v570_v3, %v333_v28 }
  0x17   : > { %v311_v38 = vadd.f32 %v565_v2, %v296_v31  ;;  %v349_v39 = vadd.f32 %v570_v3, %v334_v32  ;;  %v312_v47 = vadd.f32 %v565_v2, %v297_v36  ;;  %v335_v52 = vmul.f32 %v548_v1, %v320_v40 }
  0x18   : > { %vm361_vm1 = vcmp.ge.f32.partialorder %v353_v29, 0.0  ;;  %v369_v37 = vmul.f32 0.01, %v353_v29  ;;  %vm362_vm2 = vcmp.ge.f32.partialorder %v354_v33, 0.0  ;;  %v370_v42 = vmul.f32 0.01, %v354_v33 }
  0x19   : > { %vm363_vm3 = vcmp.ge.f32.partialorder %v355_v34, 0.0  ;;  %v371_v43 = vmul.f32 0.01, %v355_v34  ;;  %v356_v45 = vadd.f32 %v348_v35, %v310_v30  ;;  %v357_v46 = vadd.f32 %v349_v39, %v311_v38 }
  0x1a   : > { %v377_v44 = vsel %vm361_vm1, %v353_v29, %v369_v37  ;;  %v378_v50 = vsel %vm362_vm2, %v354_v33, %v370_v42  ;;  %v298_v53 = vmul.f32 %v543_v0, %v283_v41  ;;  %v350_v57 = vadd.f32 %v570_v3, %v335_v52 }
  0x1b   : > { %386 = vst.msk [vmem:[%s606_s17] sm:$0xff] %vm385_vm0, %v377_v44  ;;  %v379_v51 = vsel %vm363_vm3, %v355_v34, %v371_v43  ;;  %387 = vst.msk [vmem:[%s606_s17 + $0x8] sm:$0xff] %vm385_vm0, %v378_v50  ;;  %vm364_vm4 = vcmp.ge.f32.partialorder %v356_v45, 0.0  ;;  %v372_v55 = vmul.f32 0.01, %v356_v45  ;;  %vm365_vm5 = vcmp.ge.f32.partialorder %v357_v46, 0.0 }
  0x1c   : > { %388 = vst.msk [vmem:[%s606_s17 + $0x10] sm:$0xff] %vm385_vm0, %v379_v51  ;;  %v373_v56 = vmul.f32 0.01, %v357_v46  ;;  %v313_v58 = vadd.f32 %v565_v2, %v298_v53  ;;  %v336_v59 = vmul.f32 %v548_v1, %v321_v48  ;;  %v299_v60 = vmul.f32 %v543_v0, %v284_v49 }
  0x1d   : > { %v380_v61 = vsel %vm364_vm4, %v356_v45, %v372_v55  ;;  %v337_v63 = vmul.f32 %v548_v1, %v322_v54  ;;  %v358_v4 = vadd.f32 %v350_v57, %v312_v47 }
  0x1e   : > { %v381_v62 = vsel %vm365_vm5, %v357_v46, %v373_v56  ;;  %389 = vst.msk [vmem:[%s606_s17 + $0x18] sm:$0xff] %vm385_vm0, %v380_v61  ;;  %v351_v5 = vadd.f32 %v570_v3, %v336_v59  ;;  %v314_v6 = vadd.f32 %v565_v2, %v299_v60 }
  0x1f   : > { %390 = vst.msk [vmem:[%s606_s17 + $0x20] sm:$0xff] %vm385_vm0, %v381_v62  ;;  %v352_v7 = vadd.f32 %v570_v3, %v337_v63  ;;  %vm366_vm6 = vcmp.ge.f32.partialorder %v358_v4, 0.0  ;;  %v374_v0 = vmul.f32 0.01, %v358_v4 }
  0x20   : > { %v359_v8 = vadd.f32 %v351_v5, %v313_v58 }
  0x21   : > { %v360_v9 = vadd.f32 %v352_v7, %v314_v6  ;;  %v382_v10 = vsel %vm366_vm6, %v358_v4, %v374_v0 }
  0x22   : > { %vm367_vm7 = vcmp.ge.f32.partialorder %v359_v8, 0.0  ;;  %v375_v1 = vmul.f32 0.01, %v359_v8  ;;  %391 = vst.msk [vmem:[%s606_s17 + $0x28] sm:$0xff] %vm385_vm0, %v382_v10 }
  0x23   : > { %vm368_vm8 = vcmp.ge.f32.partialorder %v360_v9, 0.0  ;;  %v376_v11 = vmul.f32 0.01, %v360_v9 }
  0x24   : > { %v383_v12 = vsel %vm367_vm7, %v359_v8, %v375_v1 }
  0x25   : > { %392 = vst.msk [vmem:[%s606_s17 + $0x30] sm:$0xff] %vm385_vm0, %v383_v12  ;;  %v384_v13 = vsel %vm368_vm8, %v360_v9, %v376_v11 }
  0x26   : > { %393 = vst.msk [vmem:[%s606_s17 + $0x38] sm:$0xff] %vm385_vm0, %v384_v13 }
  0x27 PF: > { %s16_s21 = sadd.s32 1, %s493_s21  }
  0x28   : > { %p13_p4 = scmp.ge.s32.totalorder %s16_s21, 4  }
  0x2a   :  { %15 = sbr.rel (!%p13_p4) target bundleno = 1 (0x1), region = 77 }

</bundles_post_ra>
